<compile_context>
chip_gen: v6e
topology: v6e:2x2x1
jax: 0.10.0
libtpu: 0.0.40
codegen_flags: <defaults>
</compile_context>

<pallas_src>
import functools

import jax
import jax.numpy as jnp
from jax.experimental import pallas as pl
from jax.experimental.pallas import tpu as pltpu

EPS = 1e-5  # nn.InstanceNorm2d default eps


def _resnet_block_kernel(x_ref, w1_ref, b1_ref, w2_ref, b2_ref, o_ref, *, H, W):
    # x_ref/o_ref : (R, H*W)  R = B_TILE*C packed rows (image-major, channel-minor)
    # w*_ref      : (R, 9*R)  block-diagonal-over-batch-tile conv weights
    # b*_ref      : (R, 1)    packed conv bias
    R, HW = x_ref.shape
    x = x_ref[...]

    # Per-tap validity masks replace explicit zero padding; shared by both convs
    # and all packed rows.  Row conditions come straight from the lane index; only
    # the column condition uses `% W` (W is a static power of two here -> AND).
    pos = jax.lax.broadcasted_iota(jnp.int32, (1, HW), 1)
    col = pos % W
    offsets = [(dy, dx) for dy in (-1, 0, 1) for dx in (-1, 0, 1)]
    masks = []
    for dy, dx in offsets:
        conds = []
        if dy == -1:
            conds.append(pos >= W)              # row_idx >= 1
        elif dy == 1:
            conds.append(pos < (H - 1) * W)     # row_idx <= H-2
        if dx == -1:
            conds.append(col >= 1)
        elif dx == 1:
            conds.append(col <= W - 2)
        m = None
        for c in conds:
            m = c if m is None else (m & c)
        masks.append(m)                          # None for the centre tap

    def conv3x3(src, w_ref, b_ref):
        # im2col: tap (dy, dx) at output pixel p reads src[p + dy*W + dx]; the
        # lane roll (XLU) supplies the shift and the mask zeroes out-of-image
        # taps.  NOTE: the wrap-around lanes of shift=(-s)%HW are exactly the
        # lanes the mask kills, so the roll is only border-safe with these masks.
        taps = []
        for (dy, dx), m in zip(offsets, masks):
            s = dy * W + dx
            tap = src if s == 0 else pltpu.roll(src, shift=(-s) % HW, axis=1)
            if m is not None:
                tap = jnp.where(m, tap, 0.0)
            taps.append(tap)
        slab = jnp.concatenate(taps, axis=0)     # (9R, HW), stays in registers
        # Single MXU dot per conv for the whole batch tile (block-diag weights).
        return jnp.dot(w_ref[...], slab,
                       preferred_element_type=jnp.float32) + b_ref[...]

    def inorm_relu(y):
        # InstanceNorm2d (no affine, biased variance) per packed row + ReLU.
        # One cross-lane reduction pass for both statistics.
        stats = jnp.mean(jnp.concatenate([y, y * y], axis=0), axis=1,
                         keepdims=True)          # (2R, 1)
        mean = stats[:R, :]
        var = jnp.maximum(stats[R:, :] - mean * mean, 0.0)   # clamp: no NaNs
        return jnp.maximum((y - mean) * jax.lax.rsqrt(var + EPS), 0.0)

    y1 = inorm_relu(conv3x3(x, w1_ref, b1_ref))
    y2 = inorm_relu(conv3x3(y1, w2_ref, b2_ref))
    o_ref[...] = (y2 + x).astype(o_ref.dtype)


def _pick_batch_tile(B, C):
    # Pack enough images per grid step to fill the 8 sublanes of a vreg.
    t = min(B, max(1, 8 // max(C, 1)))
    while B % t:
        t -= 1
    return t


def resnet_block(x_nchw, w1, b1, w2, b2):
    """x_nchw: (B, C, H, W); w*: (Cout, Cin, 3, 3) PyTorch OIHW; b*: (C,)."""
    B, C, H, W = x_nchw.shape
    HW = H * W
    Bt = _pick_batch_tile(B, C)
    R = Bt * C
    x = x_nchw.reshape(B * C, HW).astype(jnp.float32)        # free reshape

    def pack_w(w):
        # (Cout, Cin, 3, 3) -> (Cout, kh*3+kw, Cin), then block-diag over the
        # batch tile: out[b*C+co, t*R + b'*C + ci] = wk[co, t, ci] * (b == b').
        wk = jnp.transpose(w, (0, 2, 3, 1)).reshape(C, 9, C).astype(jnp.float32)
        eye = jnp.eye(Bt, dtype=jnp.float32)
        return jnp.einsum('bB,otc->botBc', eye, wk).reshape(R, 9 * R)

    def pack_b(b):
        return jnp.tile(b.reshape(C, 1).astype(jnp.float32), (Bt, 1))

    wk1, wk2 = pack_w(w1), pack_w(w2)
    bk1, bk2 = pack_b(b1), pack_b(b2)

    kernel = functools.partial(_resnet_block_kernel, H=H, W=W)

    out = pl.pallas_call(
        kernel,
        out_shape=jax.ShapeDtypeStruct((B * C, HW), jnp.float32),
        grid_spec=pltpu.PrefetchScalarGridSpec(
            num_scalar_prefetch=0,
            grid=(B // Bt,),
            in_specs=[
                pl.BlockSpec((R, HW), lambda g: (g, 0)),        # x (batch tile)
                pl.BlockSpec((R, 9 * R), lambda g: (0, 0)),     # w1 (constant)
                pl.BlockSpec((R, 1), lambda g: (0, 0)),         # b1 (constant)
                pl.BlockSpec((R, 9 * R), lambda g: (0, 0)),     # w2 (constant)
                pl.BlockSpec((R, 1), lambda g: (0, 0)),         # b2 (constant)
            ],
            out_specs=pl.BlockSpec((R, HW), lambda g: (g, 0)),
        ),
        compiler_params=pltpu.CompilerParams(
            dimension_semantics=("parallel",),                  # megacore split
            vmem_limit_bytes=32 * 1024 * 1024),
    )(x, wk1, bk1, wk2, bk2)
    return out.reshape(B, C, H, W)


def _reference(x, w1, b1, w2, b2):
    # Pure-JAX reference matching the PyTorch forward (NCHW).
    def conv(x, w, b):
        y = jax.lax.conv_general_dilated(
            x, w, window_strides=(1, 1), padding=((1, 1), (1, 1)),
            dimension_numbers=("NCHW", "OIHW", "NCHW"))
        return y + b[None, :, None, None]

    def inorm(y):
        m = jnp.mean(y, axis=(2, 3), keepdims=True)
        v = jnp.mean((y - m) ** 2, axis=(2, 3), keepdims=True)
        return (y - m) / jnp.sqrt(v + EPS)

    y = jax.nn.relu(inorm(conv(x, w1, b1)))
    y = jax.nn.relu(inorm(conv(y, w2, b2)))
    return y + x


if __name__ == "__main__":
    B, C, H, W = 2, 4, 16, 16
    key = jax.random.PRNGKey(0)
    kx, kw1, kb1, kw2, kb2 = jax.random.split(key, 5)
    x = jax.random.normal(kx, (B, C, H, W), jnp.float32)

    # Deterministic synthetic parameters (PyTorch-like uniform fan-in bound)
    fan_in = C * 3 * 3
    bound = 1.0 / (fan_in ** 0.5)
    w1 = jax.random.uniform(kw1, (C, C, 3, 3), jnp.float32, -bound, bound)
    b1 = jax.random.uniform(kb1, (C,), jnp.float32, -bound, bound)
    w2 = jax.random.uniform(kw2, (C, C, 3, 3), jnp.float32, -bound, bound)
    b2 = jax.random.uniform(kb2, (C,), jnp.float32, -bound, bound)

    out = jax.block_until_ready(resnet_block(x, w1, b1, w2, b2))
    ref = _reference(x, w1, b1, w2, b2)
    assert out.shape == ref.shape == (B, C, H, W)
    err = float(jnp.max(jnp.abs(out - ref)))
    assert jnp.allclose(out, ref, atol=1e-4, rtol=1e-4), f"max abs err {err}"
    print("KERNEL_OK")
</pallas_src>

<mosaic_0001>
module attributes {stable_mosaic.version = 11 : i64} {
  func.func @_resnet_block_kernel(%arg0: i32, %arg1: memref<8x256xf32, #tpu.memory_space<vmem>>, %arg2: memref<8x72xf32, #tpu.memory_space<vmem>>, %arg3: memref<8x1xf32, #tpu.memory_space<vmem>>, %arg4: memref<8x72xf32, #tpu.memory_space<vmem>>, %arg5: memref<8x1xf32, #tpu.memory_space<vmem>>, %arg6: memref<8x256xf32, #tpu.memory_space<vmem>>) attributes {dimension_semantics = [#tpu.dimension_semantics<parallel>], iteration_bounds = array<i64: 1>, scalar_prefetch = 0 : i64, scratch_operands = 0 : i64, tpu.core_type = #tpu.core_type<tc>, window_params = [{transform_indices = @transform_0, window_bounds = array<i64: 8, 256>}, {pipeline_mode = #tpu.pipeline_mode<synchronous>, transform_indices = @transform_1, window_bounds = array<i64: 8, 72>}, {pipeline_mode = #tpu.pipeline_mode<synchronous>, transform_indices = @transform_2, window_bounds = array<i64: 8, 1>}, {pipeline_mode = #tpu.pipeline_mode<synchronous>, transform_indices = @transform_3, window_bounds = array<i64: 8, 72>}, {pipeline_mode = #tpu.pipeline_mode<synchronous>, transform_indices = @transform_4, window_bounds = array<i64: 8, 1>}, {transform_indices = @transform_5, window_bounds = array<i64: 8, 256>}]} {
    %c0 = arith.constant 0 : index
    %c0_0 = arith.constant 0 : index
    %0 = vector.load %arg1[%c0, %c0_0] : memref<8x256xf32, #tpu.memory_space<vmem>>, vector<8x256xf32>
    %1 = tpu.iota {dimensions = array<i32: 1>} : vector<1x256xi32>
    %c16_i32 = arith.constant 16 : i32
    %c0_i32 = arith.constant 0 : i32
    %2 = arith.cmpi eq, %c16_i32, %c0_i32 : i32
    %c1_i32 = arith.constant 1 : i32
    %3 = arith.select %2, %c1_i32, %c16_i32 : i32
    %4 = vector.broadcast %3 : i32 to vector<1x256xi32>
    %5 = arith.remsi %1, %4 : vector<1x256xi32>
    %c0_i32_1 = arith.constant 0 : i32
    %6 = vector.broadcast %c0_i32_1 : i32 to vector<1x256xi32>
    %7 = arith.cmpi ne, %5, %6 : vector<1x256xi32>
    %c0_i32_2 = arith.constant 0 : i32
    %8 = vector.broadcast %c0_i32_2 : i32 to vector<1x256xi32>
    %9 = arith.cmpi slt, %5, %8 : vector<1x256xi32>
    %c0_i32_3 = arith.constant 0 : i32
    %10 = arith.cmpi slt, %3, %c0_i32_3 : i32
    %11 = vector.broadcast %10 : i1 to vector<1x256xi1>
    %12 = vector.broadcast %11 : vector<1x256xi1> to vector<1x256xi1>
    %13 = arith.xori %9, %12 : vector<1x256xi1>
    %14 = arith.andi %13, %7 : vector<1x256xi1>
    %15 = vector.broadcast %3 : i32 to vector<1x256xi32>
    %16 = arith.addi %5, %15 : vector<1x256xi32>
    %17 = arith.select %14, %16, %5 : vector<1x256xi1>, vector<1x256xi32>
    %c16_i32_4 = arith.constant 16 : i32
    %18 = vector.broadcast %c16_i32_4 : i32 to vector<1x256xi32>
    %19 = arith.cmpi sge, %1, %18 : vector<1x256xi32>
    %c1_i32_5 = arith.constant 1 : i32
    %20 = vector.broadcast %c1_i32_5 : i32 to vector<1x256xi32>
    %21 = arith.cmpi sge, %17, %20 : vector<1x256xi32>
    %22 = arith.andi %19, %21 : vector<1x256xi1>
    %c16_i32_6 = arith.constant 16 : i32
    %23 = vector.broadcast %c16_i32_6 : i32 to vector<1x256xi32>
    %24 = arith.cmpi sge, %1, %23 : vector<1x256xi32>
    %c16_i32_7 = arith.constant 16 : i32
    %25 = vector.broadcast %c16_i32_7 : i32 to vector<1x256xi32>
    %26 = arith.cmpi sge, %1, %25 : vector<1x256xi32>
    %c14_i32 = arith.constant 14 : i32
    %27 = vector.broadcast %c14_i32 : i32 to vector<1x256xi32>
    %28 = arith.cmpi sle, %17, %27 : vector<1x256xi32>
    %29 = arith.andi %26, %28 : vector<1x256xi1>
    %c1_i32_8 = arith.constant 1 : i32
    %30 = vector.broadcast %c1_i32_8 : i32 to vector<1x256xi32>
    %31 = arith.cmpi sge, %17, %30 : vector<1x256xi32>
    %c14_i32_9 = arith.constant 14 : i32
    %32 = vector.broadcast %c14_i32_9 : i32 to vector<1x256xi32>
    %33 = arith.cmpi sle, %17, %32 : vector<1x256xi32>
    %c240_i32 = arith.constant 240 : i32
    %34 = vector.broadcast %c240_i32 : i32 to vector<1x256xi32>
    %35 = arith.cmpi slt, %1, %34 : vector<1x256xi32>
    %c1_i32_10 = arith.constant 1 : i32
    %36 = vector.broadcast %c1_i32_10 : i32 to vector<1x256xi32>
    %37 = arith.cmpi sge, %17, %36 : vector<1x256xi32>
    %38 = arith.andi %35, %37 : vector<1x256xi1>
    %c240_i32_11 = arith.constant 240 : i32
    %39 = vector.broadcast %c240_i32_11 : i32 to vector<1x256xi32>
    %40 = arith.cmpi slt, %1, %39 : vector<1x256xi32>
    %c240_i32_12 = arith.constant 240 : i32
    %41 = vector.broadcast %c240_i32_12 : i32 to vector<1x256xi32>
    %42 = arith.cmpi slt, %1, %41 : vector<1x256xi32>
    %c14_i32_13 = arith.constant 14 : i32
    %43 = vector.broadcast %c14_i32_13 : i32 to vector<1x256xi32>
    %44 = arith.cmpi sle, %17, %43 : vector<1x256xi32>
    %45 = arith.andi %42, %44 : vector<1x256xi1>
    %c17_i32 = arith.constant 17 : i32
    %46 = tpu.dynamic_rotate %0 by %c17_i32 dim 1 : vector<8x256xf32>, i32 -> vector<8x256xf32>
    %cst = arith.constant 0.000000e+00 : f32
    %47 = vector.shape_cast %22 : vector<1x256xi1> to vector<1x256xi1>
    %48 = vector.broadcast %47 : vector<1x256xi1> to vector<8x256xi1>
    %49 = vector.broadcast %cst : f32 to vector<8x256xf32>
    %50 = arith.select %48, %46, %49 : vector<8x256xi1>, vector<8x256xf32>
    %c16_i32_14 = arith.constant 16 : i32
    %51 = tpu.dynamic_rotate %0 by %c16_i32_14 dim 1 : vector<8x256xf32>, i32 -> vector<8x256xf32>
    %cst_15 = arith.constant 0.000000e+00 : f32
    %52 = vector.shape_cast %24 : vector<1x256xi1> to vector<1x256xi1>
    %53 = vector.broadcast %52 : vector<1x256xi1> to vector<8x256xi1>
    %54 = vector.broadcast %cst_15 : f32 to vector<8x256xf32>
    %55 = arith.select %53, %51, %54 : vector<8x256xi1>, vector<8x256xf32>
    %c15_i32 = arith.constant 15 : i32
    %56 = tpu.dynamic_rotate %0 by %c15_i32 dim 1 : vector<8x256xf32>, i32 -> vector<8x256xf32>
    %cst_16 = arith.constant 0.000000e+00 : f32
    %57 = vector.shape_cast %29 : vector<1x256xi1> to vector<1x256xi1>
    %58 = vector.broadcast %57 : vector<1x256xi1> to vector<8x256xi1>
    %59 = vector.broadcast %cst_16 : f32 to vector<8x256xf32>
    %60 = arith.select %58, %56, %59 : vector<8x256xi1>, vector<8x256xf32>
    %c1_i32_17 = arith.constant 1 : i32
    %61 = tpu.dynamic_rotate %0 by %c1_i32_17 dim 1 : vector<8x256xf32>, i32 -> vector<8x256xf32>
    %cst_18 = arith.constant 0.000000e+00 : f32
    %62 = vector.shape_cast %31 : vector<1x256xi1> to vector<1x256xi1>
    %63 = vector.broadcast %62 : vector<1x256xi1> to vector<8x256xi1>
    %64 = vector.broadcast %cst_18 : f32 to vector<8x256xf32>
    %65 = arith.select %63, %61, %64 : vector<8x256xi1>, vector<8x256xf32>
    %c255_i32 = arith.constant 255 : i32
    %66 = tpu.dynamic_rotate %0 by %c255_i32 dim 1 : vector<8x256xf32>, i32 -> vector<8x256xf32>
    %cst_19 = arith.constant 0.000000e+00 : f32
    %67 = vector.shape_cast %33 : vector<1x256xi1> to vector<1x256xi1>
    %68 = vector.broadcast %67 : vector<1x256xi1> to vector<8x256xi1>
    %69 = vector.broadcast %cst_19 : f32 to vector<8x256xf32>
    %70 = arith.select %68, %66, %69 : vector<8x256xi1>, vector<8x256xf32>
    %c241_i32 = arith.constant 241 : i32
    %71 = tpu.dynamic_rotate %0 by %c241_i32 dim 1 : vector<8x256xf32>, i32 -> vector<8x256xf32>
    %cst_20 = arith.constant 0.000000e+00 : f32
    %72 = vector.shape_cast %38 : vector<1x256xi1> to vector<1x256xi1>
    %73 = vector.broadcast %72 : vector<1x256xi1> to vector<8x256xi1>
    %74 = vector.broadcast %cst_20 : f32 to vector<8x256xf32>
    %75 = arith.select %73, %71, %74 : vector<8x256xi1>, vector<8x256xf32>
    %c240_i32_21 = arith.constant 240 : i32
    %76 = tpu.dynamic_rotate %0 by %c240_i32_21 dim 1 : vector<8x256xf32>, i32 -> vector<8x256xf32>
    %cst_22 = arith.constant 0.000000e+00 : f32
    %77 = vector.shape_cast %40 : vector<1x256xi1> to vector<1x256xi1>
    %78 = vector.broadcast %77 : vector<1x256xi1> to vector<8x256xi1>
    %79 = vector.broadcast %cst_22 : f32 to vector<8x256xf32>
    %80 = arith.select %78, %76, %79 : vector<8x256xi1>, vector<8x256xf32>
    %c239_i32 = arith.constant 239 : i32
    %81 = tpu.dynamic_rotate %0 by %c239_i32 dim 1 : vector<8x256xf32>, i32 -> vector<8x256xf32>
    %cst_23 = arith.constant 0.000000e+00 : f32
    %82 = vector.shape_cast %45 : vector<1x256xi1> to vector<1x256xi1>
    %83 = vector.broadcast %82 : vector<1x256xi1> to vector<8x256xi1>
    %84 = vector.broadcast %cst_23 : f32 to vector<8x256xf32>
    %85 = arith.select %83, %81, %84 : vector<8x256xi1>, vector<8x256xf32>
    %86 = tpu.concatenate %50, %55, %60, %65, %0, %70, %75, %80, %85 in 0 : vector<8x256xf32>, vector<8x256xf32>, vector<8x256xf32>, vector<8x256xf32>, vector<8x256xf32>, vector<8x256xf32>, vector<8x256xf32>, vector<8x256xf32>, vector<8x256xf32> -> vector<72x256xf32>
    %c0_24 = arith.constant 0 : index
    %c0_25 = arith.constant 0 : index
    %87 = vector.load %arg2[%c0_24, %c0_25] : memref<8x72xf32, #tpu.memory_space<vmem>>, vector<8x72xf32>
    %cst_26 = arith.constant dense<0.000000e+00> : vector<8x256xf32>
    %88 = tpu.matmul %87, %86, %cst_26 {dimension_numbers = #tpu.dot_dimension_numbers<[1], [0], [0], [1], [0, 0, 1, 1], [], []>} : vector<8x72xf32>, vector<72x256xf32>, vector<8x256xf32> -> vector<8x256xf32>
    %c0_27 = arith.constant 0 : index
    %c0_28 = arith.constant 0 : index
    %89 = vector.load %arg3[%c0_27, %c0_28] : memref<8x1xf32, #tpu.memory_space<vmem>>, vector<8x1xf32>
    %90 = vector.broadcast %89 : vector<8x1xf32> to vector<8x256xf32>
    %91 = arith.addf %88, %90 : vector<8x256xf32>
    %92 = arith.mulf %91, %91 : vector<8x256xf32>
    %93 = tpu.concatenate %91, %92 in 0 : vector<8x256xf32>, vector<8x256xf32> -> vector<16x256xf32>
    %cst_29 = arith.constant dense<0.000000e+00> : vector<16xf32>
    %94 = vector.multi_reduction <add>, %93, %cst_29 [1] : vector<16x256xf32> to vector<16xf32>
    %95 = vector.shape_cast %94 : vector<16xf32> to vector<16x1xf32>
    %cst_30 = arith.constant 2.560000e+02 : f32
    %96 = vector.broadcast %cst_30 : f32 to vector<16x1xf32>
    %97 = arith.divf %95, %96 : vector<16x1xf32>
    %98 = vector.extract_strided_slice %97 {offsets = [0, 0], sizes = [8, 1], strides = [1, 1]} : vector<16x1xf32> to vector<8x1xf32>
    %99 = vector.extract_strided_slice %97 {offsets = [8, 0], sizes = [8, 1], strides = [1, 1]} : vector<16x1xf32> to vector<8x1xf32>
    %100 = arith.mulf %98, %98 : vector<8x1xf32>
    %101 = arith.subf %99, %100 : vector<8x1xf32>
    %cst_31 = arith.constant 0.000000e+00 : f32
    %102 = vector.broadcast %cst_31 : f32 to vector<8x1xf32>
    %103 = arith.maximumf %101, %102 : vector<8x1xf32>
    %104 = vector.broadcast %98 : vector<8x1xf32> to vector<8x256xf32>
    %105 = arith.subf %91, %104 : vector<8x256xf32>
    %cst_32 = arith.constant 9.99999974E-6 : f32
    %106 = vector.broadcast %cst_32 : f32 to vector<8x1xf32>
    %107 = arith.addf %103, %106 : vector<8x1xf32>
    %108 = math.rsqrt %107 : vector<8x1xf32>
    %109 = vector.broadcast %108 : vector<8x1xf32> to vector<8x256xf32>
    %110 = arith.mulf %105, %109 : vector<8x256xf32>
    %cst_33 = arith.constant 0.000000e+00 : f32
    %111 = vector.broadcast %cst_33 : f32 to vector<8x256xf32>
    %112 = arith.maximumf %110, %111 : vector<8x256xf32>
    %c17_i32_34 = arith.constant 17 : i32
    %113 = tpu.dynamic_rotate %112 by %c17_i32_34 dim 1 : vector<8x256xf32>, i32 -> vector<8x256xf32>
    %cst_35 = arith.constant 0.000000e+00 : f32
    %114 = vector.shape_cast %22 : vector<1x256xi1> to vector<1x256xi1>
    %115 = vector.broadcast %114 : vector<1x256xi1> to vector<8x256xi1>
    %116 = vector.broadcast %cst_35 : f32 to vector<8x256xf32>
    %117 = arith.select %115, %113, %116 : vector<8x256xi1>, vector<8x256xf32>
    %c16_i32_36 = arith.constant 16 : i32
    %118 = tpu.dynamic_rotate %112 by %c16_i32_36 dim 1 : vector<8x256xf32>, i32 -> vector<8x256xf32>
    %cst_37 = arith.constant 0.000000e+00 : f32
    %119 = vector.shape_cast %24 : vector<1x256xi1> to vector<1x256xi1>
    %120 = vector.broadcast %119 : vector<1x256xi1> to vector<8x256xi1>
    %121 = vector.broadcast %cst_37 : f32 to vector<8x256xf32>
    %122 = arith.select %120, %118, %121 : vector<8x256xi1>, vector<8x256xf32>
    %c15_i32_38 = arith.constant 15 : i32
    %123 = tpu.dynamic_rotate %112 by %c15_i32_38 dim 1 : vector<8x256xf32>, i32 -> vector<8x256xf32>
    %cst_39 = arith.constant 0.000000e+00 : f32
    %124 = vector.shape_cast %29 : vector<1x256xi1> to vector<1x256xi1>
    %125 = vector.broadcast %124 : vector<1x256xi1> to vector<8x256xi1>
    %126 = vector.broadcast %cst_39 : f32 to vector<8x256xf32>
    %127 = arith.select %125, %123, %126 : vector<8x256xi1>, vector<8x256xf32>
    %c1_i32_40 = arith.constant 1 : i32
    %128 = tpu.dynamic_rotate %112 by %c1_i32_40 dim 1 : vector<8x256xf32>, i32 -> vector<8x256xf32>
    %cst_41 = arith.constant 0.000000e+00 : f32
    %129 = vector.shape_cast %31 : vector<1x256xi1> to vector<1x256xi1>
    %130 = vector.broadcast %129 : vector<1x256xi1> to vector<8x256xi1>
    %131 = vector.broadcast %cst_41 : f32 to vector<8x256xf32>
    %132 = arith.select %130, %128, %131 : vector<8x256xi1>, vector<8x256xf32>
    %c255_i32_42 = arith.constant 255 : i32
    %133 = tpu.dynamic_rotate %112 by %c255_i32_42 dim 1 : vector<8x256xf32>, i32 -> vector<8x256xf32>
    %cst_43 = arith.constant 0.000000e+00 : f32
    %134 = vector.shape_cast %33 : vector<1x256xi1> to vector<1x256xi1>
    %135 = vector.broadcast %134 : vector<1x256xi1> to vector<8x256xi1>
    %136 = vector.broadcast %cst_43 : f32 to vector<8x256xf32>
    %137 = arith.select %135, %133, %136 : vector<8x256xi1>, vector<8x256xf32>
    %c241_i32_44 = arith.constant 241 : i32
    %138 = tpu.dynamic_rotate %112 by %c241_i32_44 dim 1 : vector<8x256xf32>, i32 -> vector<8x256xf32>
    %cst_45 = arith.constant 0.000000e+00 : f32
    %139 = vector.shape_cast %38 : vector<1x256xi1> to vector<1x256xi1>
    %140 = vector.broadcast %139 : vector<1x256xi1> to vector<8x256xi1>
    %141 = vector.broadcast %cst_45 : f32 to vector<8x256xf32>
    %142 = arith.select %140, %138, %141 : vector<8x256xi1>, vector<8x256xf32>
    %c240_i32_46 = arith.constant 240 : i32
    %143 = tpu.dynamic_rotate %112 by %c240_i32_46 dim 1 : vector<8x256xf32>, i32 -> vector<8x256xf32>
    %cst_47 = arith.constant 0.000000e+00 : f32
    %144 = vector.shape_cast %40 : vector<1x256xi1> to vector<1x256xi1>
    %145 = vector.broadcast %144 : vector<1x256xi1> to vector<8x256xi1>
    %146 = vector.broadcast %cst_47 : f32 to vector<8x256xf32>
    %147 = arith.select %145, %143, %146 : vector<8x256xi1>, vector<8x256xf32>
    %c239_i32_48 = arith.constant 239 : i32
    %148 = tpu.dynamic_rotate %112 by %c239_i32_48 dim 1 : vector<8x256xf32>, i32 -> vector<8x256xf32>
    %cst_49 = arith.constant 0.000000e+00 : f32
    %149 = vector.shape_cast %45 : vector<1x256xi1> to vector<1x256xi1>
    %150 = vector.broadcast %149 : vector<1x256xi1> to vector<8x256xi1>
    %151 = vector.broadcast %cst_49 : f32 to vector<8x256xf32>
    %152 = arith.select %150, %148, %151 : vector<8x256xi1>, vector<8x256xf32>
    %153 = tpu.concatenate %117, %122, %127, %132, %112, %137, %142, %147, %152 in 0 : vector<8x256xf32>, vector<8x256xf32>, vector<8x256xf32>, vector<8x256xf32>, vector<8x256xf32>, vector<8x256xf32>, vector<8x256xf32>, vector<8x256xf32>, vector<8x256xf32> -> vector<72x256xf32>
    %c0_50 = arith.constant 0 : index
    %c0_51 = arith.constant 0 : index
    %154 = vector.load %arg4[%c0_50, %c0_51] : memref<8x72xf32, #tpu.memory_space<vmem>>, vector<8x72xf32>
    %cst_52 = arith.constant dense<0.000000e+00> : vector<8x256xf32>
    %155 = tpu.matmul %154, %153, %cst_52 {dimension_numbers = #tpu.dot_dimension_numbers<[1], [0], [0], [1], [0, 0, 1, 1], [], []>} : vector<8x72xf32>, vector<72x256xf32>, vector<8x256xf32> -> vector<8x256xf32>
    %c0_53 = arith.constant 0 : index
    %c0_54 = arith.constant 0 : index
    %156 = vector.load %arg5[%c0_53, %c0_54] : memref<8x1xf32, #tpu.memory_space<vmem>>, vector<8x1xf32>
    %157 = vector.broadcast %156 : vector<8x1xf32> to vector<8x256xf32>
    %158 = arith.addf %155, %157 : vector<8x256xf32>
    %159 = arith.mulf %158, %158 : vector<8x256xf32>
    %160 = tpu.concatenate %158, %159 in 0 : vector<8x256xf32>, vector<8x256xf32> -> vector<16x256xf32>
    %cst_55 = arith.constant dense<0.000000e+00> : vector<16xf32>
    %161 = vector.multi_reduction <add>, %160, %cst_55 [1] : vector<16x256xf32> to vector<16xf32>
    %162 = vector.shape_cast %161 : vector<16xf32> to vector<16x1xf32>
    %cst_56 = arith.constant 2.560000e+02 : f32
    %163 = vector.broadcast %cst_56 : f32 to vector<16x1xf32>
    %164 = arith.divf %162, %163 : vector<16x1xf32>
    %165 = vector.extract_strided_slice %164 {offsets = [0, 0], sizes = [8, 1], strides = [1, 1]} : vector<16x1xf32> to vector<8x1xf32>
    %166 = vector.extract_strided_slice %164 {offsets = [8, 0], sizes = [8, 1], strides = [1, 1]} : vector<16x1xf32> to vector<8x1xf32>
    %167 = arith.mulf %165, %165 : vector<8x1xf32>
    %168 = arith.subf %166, %167 : vector<8x1xf32>
    %cst_57 = arith.constant 0.000000e+00 : f32
    %169 = vector.broadcast %cst_57 : f32 to vector<8x1xf32>
    %170 = arith.maximumf %168, %169 : vector<8x1xf32>
    %171 = vector.broadcast %165 : vector<8x1xf32> to vector<8x256xf32>
    %172 = arith.subf %158, %171 : vector<8x256xf32>
    %cst_58 = arith.constant 9.99999974E-6 : f32
    %173 = vector.broadcast %cst_58 : f32 to vector<8x1xf32>
    %174 = arith.addf %170, %173 : vector<8x1xf32>
    %175 = math.rsqrt %174 : vector<8x1xf32>
    %176 = vector.broadcast %175 : vector<8x1xf32> to vector<8x256xf32>
    %177 = arith.mulf %172, %176 : vector<8x256xf32>
    %cst_59 = arith.constant 0.000000e+00 : f32
    %178 = vector.broadcast %cst_59 : f32 to vector<8x256xf32>
    %179 = arith.maximumf %177, %178 : vector<8x256xf32>
    %180 = arith.addf %179, %0 : vector<8x256xf32>
    %c0_60 = arith.constant 0 : index
    %c0_61 = arith.constant 0 : index
    %181 = vector.load %arg6[%c0_60, %c0_61] : memref<8x256xf32, #tpu.memory_space<vmem>>, vector<8x256xf32>
    tpu.vector_store %arg6[%c0_60, %c0_61], %180 {strides = array<i32>} : memref<8x256xf32, #tpu.memory_space<vmem>>, vector<8x256xf32>,
    return
  }
  func.func @transform_0(%arg0: i32) -> (i32, i32) {
    %c0_i32 = arith.constant 0 : i32
    %c0_i32_0 = arith.constant 0 : i32
    return %arg0, %c0_i32 : i32, i32
  }
  func.func @transform_1(%arg0: i32) -> (i32, i32) {
    %c0_i32 = arith.constant 0 : i32
    %c0_i32_0 = arith.constant 0 : i32
    %c0_i32_1 = arith.constant 0 : i32
    return %c0_i32, %c0_i32_0 : i32, i32
  }
  func.func @transform_2(%arg0: i32) -> (i32, i32) {
    %c0_i32 = arith.constant 0 : i32
    %c0_i32_0 = arith.constant 0 : i32
    %c0_i32_1 = arith.constant 0 : i32
    return %c0_i32, %c0_i32_0 : i32, i32
  }
  func.func @transform_3(%arg0: i32) -> (i32, i32) {
    %c0_i32 = arith.constant 0 : i32
    %c0_i32_0 = arith.constant 0 : i32
    %c0_i32_1 = arith.constant 0 : i32
    return %c0_i32, %c0_i32_0 : i32, i32
  }
  func.func @transform_4(%arg0: i32) -> (i32, i32) {
    %c0_i32 = arith.constant 0 : i32
    %c0_i32_0 = arith.constant 0 : i32
    %c0_i32_1 = arith.constant 0 : i32
    return %c0_i32, %c0_i32_0 : i32, i32
  }
  func.func @transform_5(%arg0: i32) -> (i32, i32) {
    %c0_i32 = arith.constant 0 : i32
    %c0_i32_0 = arith.constant 0 : i32
    return %arg0, %c0_i32 : i32, i32
  }
}

</mosaic_0001>

<bundles_post_ra>
// kernel: tpu_custom_call.1
= control target key start
LH: loop header
LB: loop body
LE: loop exit
PB: predicated region body
PF: predicated region fallthrough
CT: control target
= control target key end

     0   :  { %10 = vsyncpa [#allocation3], 0  ;;  %s905_s0 = inlined_call_operand.vmem [shape: f32[8,256], index: 0, kind: input, shape index: {}]   ;;  %s906_s1 = inlined_call_operand.hbm [shape: f32[8,72], index: 1, kind: input, shape index: {}]   ;;  %s907_s2 = inlined_call_operand.vmem [shape: f32[8,1], index: 2, kind: input, shape index: {}]   ;;  %s908_s3 = inlined_call_operand.hbm [shape: f32[8,72], index: 3, kind: input, shape index: {}]   ;;  %s909_s4 = inlined_call_operand.vmem [shape: f32[8,1], index: 4, kind: input, shape index: {}]   ;;  %s910_s5 = inlined_call_operand.hbm [shape: f32[8,256], index: 5, kind: output, shape index: {}]  }
   0x1   :  { %11 = vsyncpa [#allocation6], 0 }
   0x2   :  { %12 = vsyncpa [#allocation4], 0  ;;  %s598_s18 = smov [#allocation2]   ;;  %s599_s20 = smov [#allocation5]  }
   0x3   :  { %s21_s19 = sshll.u32 %s598_s18, 4  ;;  %s33_s21 = sshll.u32 %s599_s20, 4  ;;  %s22_s19 = int_to_ptr.vmem [resolvable:$true] %s21_s19  ;;  %s34_s21 = int_to_ptr.vmem [resolvable:$true] %s33_s21 }
   0x4   :  { %s540_s22 = scalar_lea.vmem %s22_s19, 128  ;;  %p545_p1 = scmp.lt.s32.totalorder %s22_s19, %s22_s19 }
   0x5   :  { %p541_p0 = scmp.ne.s32.totalorder %s22_s19, %s540_s22  ;;  %p546_p2 = scmp.lt.s32.totalorder %s540_s22, %s540_s22 }
   0x7   :  { %p547_p3 = por %p546_p2, %p545_p1 }
   0x9   :  { %p548_p4 = pnand %p547_p3, %p541_p0 }
   0xb   :  { %551 = shalt.err (!%p548_p4)
}
   0xc   :  { %24 = dma.hbm_to_vmem [thread:$0]  %s906_s1, 128, %s22_s19, [#allocation3]  }
   0xd   :  { %s560_s25 = scalar_lea.vmem %s34_s21, 128  ;;  %p565_p6 = scmp.lt.s32.totalorder %s34_s21, %s34_s21 }
   0xe   :  { %p561_p5 = scmp.ne.s32.totalorder %s34_s21, %s560_s25  ;;  %p566_p7 = scmp.lt.s32.totalorder %s560_s25, %s560_s25 }
  0x10   :  { %p567_p8 = por %p566_p7, %p565_p6 }
  0x12   :  { %p568_p9 = pnand %p567_p8, %p561_p5 }
  0x14   :  { %571 = shalt.err (!%p568_p9)
}
  0x15   :  { %36 = dma.hbm_to_vmem [thread:$0]  %s908_s3, 128, %s34_s21, [#allocation6]  }
  0x16   :  { %592 = dma.done.wait [#allocation3], 128  }
  0x17   :  { %593 = vsyncadd [#allocation3], 4294967168 }
  0x18   :  { %594 = dma.done.wait [#allocation6], 128  }
  0x19   :  { %595 = vsyncadd [#allocation6], 4294967168  ;;  %v650_v0 = vld [vmem:[%s905_s0] sm:$0xff]  ;;  %s600_s1 = smov 112   ;;  %s601_s30 = smov 111   ;;  %v659_v1 = vld [vmem:[%s905_s0 + $0x8] sm:$0xff]  ;;  %v47_v5 = vlaneseq }
  0x1a   :  { %168 = vrot.lane.b32.xlu1 %v650_v0, %s600_s1  ;;  %181 = vrot.lane.b32.xlu0 %v650_v0, %s601_s30  ;;  %s602_s3 = smov 113   ;;  %s603_s8 = smov 127   ;;  %v605_v2 = vmov 0.0   ;;  %v606_v3 = vmov 0   ;;  %v195_v4 = vld [vmem:[%s907_s2] sm:$0xff] }
  0x1b   :  { %s604_s0 = smov 1   ;;  %269 = vmatprep.mubr.f32.mxu0 %v605_v2  ;;  %436 = vmatprep.mubr.f32.mxu1 %v605_v2  ;;  %s607_s9 = smov 15   ;;  %v692_v6 = vand.u32 127, %v47_v5  ;;  %v194_v50 = vld [vmem:[#allocation2] sm:$0xff] }
  0x1c   :  { %527 = vset.pattern.permute.xlu0 %v606_v3  ;;  %s608_s10 = smov 16   ;;  %s609_s11 = smov 17  }
  0x1d   :  { %v695_v7 = vadd.s32 128, %v692_v6  ;;  %v54_v12 = vand.u32 15, %v692_v6  ;;  %vm185_vm2 = vcmp.lt.s32.totalorder %v692_v6, 111  ;;  %vm172_vm4 = vcmp.lt.s32.totalorder %v692_v6, 112 }
  0x1e   :  { %170 = vrot.lane.b32.xlu1 %v659_v1, %s600_s1  ;;  %183 = vrot.lane.b32.xlu0 %v659_v1, %s601_s30  ;;  %vm159_vm7 = vcmp.lt.s32.totalorder %v692_v6, 113  ;;  %vm146_vm10 = vcmp.lt.s32.totalorder %v692_v6, 127  ;;  %vm911_vm11 = vcmp.lt.s32.totalorder %v692_v6, 1  ;;  %vm74_vm12 = vcmp.ge.s32.totalorder %v692_v6, 16 }
  0x1f   :  { %v61_v8 = vand.u32 15, %v695_v7  ;;  %vm85_vm1 = vcmp.lt.s32.totalorder %v695_v7, 240  ;;  %vm714_vm5 = vcmp.le.s32.totalorder %v54_v12, 14  ;;  %vm745_vm9 = vcmp.ge.s32.totalorder %v54_v12, 1 }
  0x20   :  { %vm912_vm13 = vcmp.lt.s32.totalorder %v692_v6, 15  ;;  %vm783_vm14 = vmand %vm74_vm12, %vm714_vm5  ;;  %vm913_vm15 = vcmp.lt.s32.totalorder %v692_v6, 16 }
  0x21   :  { %vm698_vm0 = vcmp.le.s32.totalorder %v61_v8, 14  ;;  %vm718_vm6 = vcmp.ge.s32.totalorder %v61_v8, 1 }
  0x22   :  { %157 = vrot.lane.b32.xlu1 %v659_v1, %s602_s3  ;;  %155 = vrot.lane.b32.xlu0 %v650_v0, %s602_s3  ;;  %vm709_vm3 = vmand %vm85_vm1, %vm698_vm0 }
  0x23   :  { %vm737_vm8 = vmand %vm85_vm1, %vm718_vm6 }
  0x26   :  { %144 = vrot.lane.b32.xlu1 %v659_v1, %s603_s8  ;;  %142 = vrot.lane.b32.xlu0 %v650_v0, %s603_s8 }
  0x2a   :  { %131 = vrot.lane.b32.xlu1 %v659_v1, %s604_s0  ;;  %129 = vrot.lane.b32.xlu0 %v650_v0, %s604_s0 }
  0x2e   :  { %118 = vrot.lane.b32.xlu1 %v659_v1, %s607_s9  ;;  %116 = vrot.lane.b32.xlu0 %v650_v0, %s607_s9 }
  0x32   :  { %105 = vrot.lane.b32.xlu1 %v659_v1, %s608_s10  ;;  %103 = vrot.lane.b32.xlu0 %v650_v0, %s608_s10 }
  0x36   :  { %92 = vrot.lane.b32.xlu1 %v659_v1, %s609_s11  ;;  %90 = vrot.lane.b32.xlu0 %v650_v0, %s609_s11 }
  0x3a   :  { %198 = vperm.xlu0 %527, %v195_v4  }
  0x8c   :  { %v169_v9 = vpop.permute.xlu1 %168  ;;  %v182_v10 = vpop.permute.xlu0 %181 }
  0x90   :  { %v171_v14 = vpop.permute.xlu1 %170  ;;  %v184_v15 = vpop.permute.xlu0 %183 }
  0x91   :  { %v187_v18 = vsel %vm185_vm2, %v184_v15, %v182_v10  ;;  %v186_v19 = vsel %vm185_vm2, %v182_v10, %v184_v15  ;;  %v174_v20 = vsel %vm172_vm4, %v171_v14, %v169_v9  ;;  %v173_v24 = vsel %vm172_vm4, %v169_v9, %v171_v14 }
  0x92   :  { %484 = vmatprep.subr.msk.mxu0 %vm709_vm3, %v187_v18 }
  0x93   :  { %485 = vmatpush1.msk.msra.mxu0 %vm714_vm5, %v186_v19  ;;  %v363_v19 = vld [vmem:[%s909_s4] sm:$0xff]  ;;  %s610_s4 = smov [#allocation7]  }
  0x94   :  { %v158_v22 = vpop.permute.xlu1 %157  ;;  %486 = vmatprep.subr.msk.mxu0 %vm85_vm1, %v174_v20  ;;  %v156_v23 = vpop.permute.xlu0 %155  ;;  %s474_s15 = sshll.u32 %s610_s4, 4  ;;  %s475_s15 = int_to_ptr.vmem [resolvable:$true] %s474_s15 }
  0x95   :  { %v160_v26 = vsel %vm159_vm7, %v156_v23, %v158_v22  ;;  %v161_v27 = vsel %vm159_vm7, %v158_v22, %v156_v23  ;;  %222 = vmatpush1.msra.mxu0 %v173_v24  ;;  %s572_s16 = scalar_lea.vmem %s475_s15, 256  ;;  %p577_p11 = scmp.lt.s32.totalorder %s475_s15, %s475_s15 }
  0x96   :  { %487 = vmatprep.subr.msk.mxu0 %vm737_vm8, %v161_v27  ;;  %p573_p10 = scmp.ne.s32.totalorder %s475_s15, %s572_s16  ;;  %p578_p12 = scmp.lt.s32.totalorder %s572_s16, %s572_s16 }
  0x97   :  { %488 = vmatpush1.msk.msra.mxu0 %vm745_vm9, %v160_v26 }
  0x98   :  { %v145_v28 = vpop.permute.xlu1 %144  ;;  %v143_v29 = vpop.permute.xlu0 %142  ;;  %p579_p13 = por %p578_p12, %p577_p11 }
  0x99   :  { %v147_v30 = vsel %vm146_vm10, %v143_v29, %v145_v28  ;;  %v148_v31 = vsel %vm146_vm10, %v145_v28, %v143_v29 }
  0x9a   :  { %489 = vmatprep.subr.msk.mxu0 %vm698_vm0, %v148_v31  ;;  %p580_p0 = pnand %p579_p13, %p573_p10 }
  0x9b   :  { %490 = vmatpush1.msk.msra.mxu0 %vm714_vm5, %v147_v30 }
  0x9c   :  { %v132_v32 = vpop.permute.xlu1 %131  ;;  %227 = vmatprep.subr.mxu0 %v659_v1  ;;  %v130_v33 = vpop.permute.xlu0 %129 }
  0x9d   :  { %v134_v34 = vsel %vm911_vm11, %v130_v33, %v132_v32  ;;  %v135_v35 = vsel %vm911_vm11, %v132_v32, %v130_v33  ;;  %228 = vmatpush1.msra.mxu0 %v650_v0  ;;  %vm94_vm11 = vcmp.lt.s32.totalorder %v692_v6, 17 }
  0x9e   :  { %491 = vmatprep.subr.msk.mxu0 %vm718_vm6, %v134_v34 }
  0x9f   :  { %492 = vmatpush1.msk.msra.mxu0 %vm745_vm9, %v135_v35 }
  0xa0   :  { %v119_v36 = vpop.permute.xlu1 %118  ;;  %v117_v37 = vpop.permute.xlu0 %116 }
  0xa1   :  { %v121_v39 = vsel %vm912_vm13, %v117_v37, %v119_v36  ;;  %v122_v40 = vsel %vm912_vm13, %v119_v36, %v117_v37  ;;  %vm807_vm13 = vmand %vm74_vm12, %vm745_vm9 }
  0xa2   :  { %493 = vmatprep.subr.msk.mxu0 %vm698_vm0, %v121_v39 }
  0xa3   :  { %494 = vmatpush1.msk.msra.mxu0 %vm783_vm14, %v122_v40 }
  0xa4   :  { %v106_v41 = vpop.permute.xlu1 %105  ;;  %v104_v42 = vpop.permute.xlu0 %103 }
  0xa5   :  { %v109_v43 = vsel %vm913_vm15, %v106_v41, %v104_v42  ;;  %v108_v44 = vsel %vm913_vm15, %v104_v42, %v106_v41  ;;  %vm201_vm15 = vcmask 588800  }
  0xa6   :  { %233 = vmatprep.subr.mxu0 %v108_v44 }
  0xa7   :  { %495 = vmatpush1.msk.msra.mxu0 %vm74_vm12, %v109_v43 }
  0xa8   :  { %v93_v45 = vpop.permute.xlu1 %92  ;;  %v91_v46 = vpop.permute.xlu0 %90 }
  0xa9   :  { %v95_v48 = vsel %vm94_vm11, %v91_v46, %v93_v45  ;;  %v96_v49 = vsel %vm94_vm11, %v93_v45, %v91_v46 }
  0xaa   :  { %496 = vmatprep.subr.msk.mxu0 %vm718_vm6, %v95_v48 }
  0xab   :  { %497 = vmatpush1.msk.msra.mxu0 %vm807_vm13, %v96_v49  ;;  %v362_v49 = vld [vmem:[#allocation5] sm:$0xff] }
  0xac   :  { %498 = vmatmul.mubr.msk.f32.vlgmr.msra.gmra.mxu0 %vm201_vm15, %v194_v50 }
  0xb5   :  { %v199_v51 = vpop.permute.xlu0 %198 }
 0x16c   :  { %v271_v52 = vpop.f32.mrf.mxu0 }
 0x16d   :  { %v272_v53 = vadd.f32 %v271_v52, %v199_v51 }
 0x16e   :  { %v273_v54 = vpop.f32.mrf.mxu0 }
 0x16f   :  { %v274_v55 = vadd.f32 %v273_v54, %v199_v51  ;;  %v276_v57 = vmul.f32 %v272_v53, %v272_v53 }
 0x171   :  { %v278_v56 = vadd.f32 %v274_v55, %v272_v53  ;;  %v277_v58 = vmul.f32 %v274_v55, %v274_v55 }
 0x173   :  { %279 = vadd.xlane.f32.xlu1 %v278_v56  ;;  %v281_v59 = vadd.f32 %v277_v58, %v276_v57 }
 0x175   :  { %282 = vadd.xlane.f32.xlu0 %v281_v59 }
 0x1fc   :  { %v280_v60 = vpop.xlane.xlu1 %279 }
 0x1fd   :  { %v285_v61 = vmul.f32 0.00390625, %v280_v60 }
 0x1fe   :  { %v283_v62 = vpop.xlane.xlu0 %282 }
 0x1ff   :  { %v287_v63 = vmul.f32 %v285_v61, %v285_v61  ;;  %v286_v2 = vmul.f32 0.00390625, %v283_v62  ;;  %v290_v8 = vsub.f32 %v272_v53, %v285_v61  ;;  %v291_v9 = vsub.f32 %v274_v55, %v285_v61 }
 0x201   :  { %v288_v3 = vsub.f32 %v286_v2, %v287_v63 }
 0x203   :  { %v289_v4 = vmax.f32 %v288_v3, 0.0 }
 0x205   :  { %v292_v5 = vadd.f32 1e-05, %v289_v4 }
 0x207   :  { %528 = vrsqrt.f32 %v292_v5 }
 0x214   :  { %v529_v10 = vpop.eup %528 }
 0x215   :  { %v294_v12 = vmul.f32 %v529_v10, %v290_v8  ;;  %v295_v14 = vmul.f32 %v529_v10, %v291_v9 }
 0x217   :  { %v296_v15 = vmax.f32 %v294_v12, 0.0  ;;  %v297_v18 = vmax.f32 %v295_v14, 0.0 }
 0x219   :  { %356 = vrot.lane.b32.xlu0 %v297_v18, %s601_s30  ;;  %354 = vrot.lane.b32.xlu1 %v296_v15, %s601_s30 }
 0x21d   :  { %338 = vrot.lane.b32.xlu0 %v296_v15, %s602_s3  ;;  %346 = vrot.lane.b32.xlu1 %v296_v15, %s600_s1 }
 0x221   :  { %330 = vrot.lane.b32.xlu0 %v296_v15, %s603_s8  ;;  %348 = vrot.lane.b32.xlu1 %v297_v18, %s600_s1 }
 0x225   :  { %322 = vrot.lane.b32.xlu0 %v296_v15, %s604_s0  ;;  %340 = vrot.lane.b32.xlu1 %v297_v18, %s602_s3 }
 0x229   :  { %314 = vrot.lane.b32.xlu0 %v296_v15, %s607_s9  ;;  %332 = vrot.lane.b32.xlu1 %v297_v18, %s603_s8 }
 0x22d   :  { %306 = vrot.lane.b32.xlu0 %v296_v15, %s608_s10  ;;  %324 = vrot.lane.b32.xlu1 %v297_v18, %s604_s0 }
 0x231   :  { %298 = vrot.lane.b32.xlu0 %v296_v15, %s609_s11  ;;  %316 = vrot.lane.b32.xlu1 %v297_v18, %s607_s9 }
 0x235   :  { %366 = vperm.xlu0 %527, %v363_v19   ;;  %308 = vrot.lane.b32.xlu1 %v297_v18, %s608_s10 }
 0x239   :  { %300 = vrot.lane.b32.xlu1 %v297_v18, %s609_s11 }
 0x28b   :  { %v357_v20 = vpop.permute.xlu0 %356  ;;  %v355_v22 = vpop.permute.xlu1 %354 }
 0x28c   :  { %v359_v23 = vsel %vm185_vm2, %v357_v20, %v355_v22  ;;  %v358_v24 = vsel %vm185_vm2, %v355_v22, %v357_v20 }
 0x28d   :  { %499 = vmatprep.subr.msk.mxu1 %vm709_vm3, %v359_v23  ;;  %vm932_vm3 = vcmp.lt.s32.totalorder %v692_v6, 15 }
 0x28e   :  { %500 = vmatpush1.msk.msra.mxu1 %vm714_vm5, %v358_v24 }
 0x28f   :  { %v339_v26 = vpop.permute.xlu0 %338  ;;  %v347_v27 = vpop.permute.xlu1 %346 }
 0x293   :  { %v331_v28 = vpop.permute.xlu0 %330  ;;  %v349_v29 = vpop.permute.xlu1 %348 }
 0x294   :  { %v351_v30 = vsel %vm172_vm4, %v349_v29, %v347_v27  ;;  %v350_v31 = vsel %vm172_vm4, %v347_v27, %v349_v29  ;;  %vm933_vm4 = vmmov %vm932_vm3 }
 0x295   :  { %501 = vmatprep.subr.msk.mxu1 %vm85_vm1, %v351_v30  ;;  %vm930_vm1 = vcmp.lt.s32.totalorder %v692_v6, 1 }
 0x296   :  { %389 = vmatpush1.msra.mxu1 %v350_v31  ;;  %vm931_vm2 = vmmov %vm930_vm1 }
 0x297   :  { %v341_v32 = vpop.permute.xlu1 %340  ;;  %v323_v34 = vpop.permute.xlu0 %322 }
 0x298   :  { %v342_v13 = vsel %vm159_vm7, %v339_v26, %v341_v32  ;;  %v343_v33 = vsel %vm159_vm7, %v341_v32, %v339_v26 }
 0x299   :  { %502 = vmatprep.subr.msk.mxu1 %vm737_vm8, %v343_v33 }
 0x29a   :  { %503 = vmatpush1.msk.msra.mxu1 %vm745_vm9, %v342_v13 }
 0x29b   :  { %v333_v35 = vpop.permute.xlu1 %332  ;;  %v315_v37 = vpop.permute.xlu0 %314 }
 0x29c   :  { %v334_v7 = vsel %vm146_vm10, %v331_v28, %v333_v35  ;;  %v335_v36 = vsel %vm146_vm10, %v333_v35, %v331_v28 }
 0x29d   :  { %504 = vmatprep.subr.msk.mxu1 %vm698_vm0, %v335_v36 }
 0x29e   :  { %505 = vmatpush1.msk.msra.mxu1 %vm714_vm5, %v334_v7  ;;  %vm934_vm5 = vcmp.lt.s32.totalorder %v692_v6, 16 }
 0x29f   :  { %394 = vmatprep.subr.mxu1 %v297_v18  ;;  %v325_v21 = vpop.permute.xlu1 %324  ;;  %v307_v43 = vpop.permute.xlu0 %306  ;;  %vm935_vm7 = vmmov %vm934_vm5 }
 0x2a0   :  { %v326_v39 = vsel %vm930_vm1, %v323_v34, %v325_v21  ;;  %v327_v40 = vsel %vm931_vm2, %v325_v21, %v323_v34  ;;  %395 = vmatpush1.msra.mxu1 %v296_v15 }
 0x2a1   :  { %506 = vmatprep.subr.msk.mxu1 %vm718_vm6, %v326_v39 }
 0x2a2   :  { %507 = vmatpush1.msk.msra.mxu1 %vm745_vm9, %v327_v40 }
 0x2a3   :  { %v317_v41 = vpop.permute.xlu1 %316  ;;  %v299_v46 = vpop.permute.xlu0 %298 }
 0x2a4   :  { %v318_v16 = vsel %vm932_vm3, %v315_v37, %v317_v41  ;;  %v319_v42 = vsel %vm933_vm4, %v317_v41, %v315_v37 }
 0x2a5   :  { %508 = vmatprep.subr.msk.mxu1 %vm698_vm0, %v318_v16 }
 0x2a6   :  { %509 = vmatpush1.msk.msra.mxu1 %vm783_vm14, %v319_v42 }
 0x2a7   :  { %v309_v44 = vpop.permute.xlu1 %308 }
 0x2a8   :  { %v311_v45 = vsel %vm934_vm5, %v309_v44, %v307_v43  ;;  %v310_v25 = vsel %vm935_vm7, %v307_v43, %v309_v44 }
 0x2a9   :  { %400 = vmatprep.subr.mxu1 %v310_v25 }
 0x2aa   :  { %510 = vmatpush1.msk.msra.mxu1 %vm74_vm12, %v311_v45 }
 0x2ab   :  { %v301_v48 = vpop.permute.xlu1 %300 }
 0x2ac   :  { %v302_v11 = vsel %vm94_vm11, %v299_v46, %v301_v48  ;;  %v303_v38 = vsel %vm94_vm11, %v301_v48, %v299_v46 }
 0x2ad   :  { %511 = vmatprep.subr.msk.mxu1 %vm718_vm6, %v302_v11 }
 0x2ae   :  { %512 = vmatpush1.msk.msra.mxu1 %vm807_vm13, %v303_v38 }
 0x2af   :  { %513 = vmatmul.mubr.msk.f32.vlgmr.msra.gmra.mxu1 %vm201_vm15, %v362_v49 }
 0x2b0   :  { %v367_v50 = vpop.permute.xlu0 %366 }
 0x36f   :  { %v438_v51 = vpop.f32.mrf.mxu1 }
 0x370   :  { %v439_v52 = vadd.f32 %v438_v51, %v367_v50 }
 0x371   :  { %v440_v53 = vpop.f32.mrf.mxu1 }
 0x372   :  { %v441_v54 = vadd.f32 %v440_v53, %v367_v50  ;;  %v443_v56 = vmul.f32 %v439_v52, %v439_v52 }
 0x374   :  { %v445_v55 = vadd.f32 %v441_v54, %v439_v52  ;;  %v444_v57 = vmul.f32 %v441_v54, %v441_v54 }
 0x376   :  { %446 = vadd.xlane.f32.xlu1 %v445_v55  ;;  %v448_v6 = vadd.f32 %v444_v57, %v443_v56 }
 0x378   :  { %449 = vadd.xlane.f32.xlu0 %v448_v6 }
 0x3ff   :  { %v447_v58 = vpop.xlane.xlu1 %446 }
 0x400   :  { %v451_v59 = vmul.f32 0.00390625, %v447_v58 }
 0x401   :  { %v450_v17 = vpop.xlane.xlu0 %449 }
 0x402   :  { %v453_v60 = vmul.f32 %v451_v59, %v451_v59  ;;  %v452_v61 = vmul.f32 0.00390625, %v450_v17  ;;  %v456_v2 = vsub.f32 %v439_v52, %v451_v59  ;;  %v457_v3 = vsub.f32 %v441_v54, %v451_v59 }
 0x404   :  { %v454_v47 = vsub.f32 %v452_v61, %v453_v60 }
 0x406   :  { %v455_v62 = vmax.f32 %v454_v47, 0.0 }
 0x408   :  { %v458_v63 = vadd.f32 1e-05, %v455_v62 }
 0x40a   :  { %530 = vrsqrt.f32 %v458_v63 }
 0x417   :  { %v531_v4 = vpop.eup %530 }
 0x418   :  { %v460_v5 = vmul.f32 %v531_v4, %v456_v2  ;;  %v461_v8 = vmul.f32 %v531_v4, %v457_v3 }
 0x41a   :  { %v462_v9 = vmax.f32 %v460_v5, 0.0  ;;  %v463_v10 = vmax.f32 %v461_v8, 0.0 }
 0x41c   :  { %v464_v12 = vadd.f32 %v462_v9, %v650_v0  ;;  %v465_v14 = vadd.f32 %v463_v10, %v659_v1 }
 0x41e   :  { %466 = vst [vmem:[#allocation7] sm:$0xff] %v464_v12  ;;  %467 = vst [vmem:[#allocation7 + $0x8] sm:$0xff] %v465_v14 }
 0x41f   :  { %583 = shalt.err (!%p580_p0)
}
 0x420   :  { %477 = dma.vmem_to_hbm [thread:$0]  %s475_s15, 256, %s910_s5, [#allocation4]  }
 0x421   :  { %596 = dma.done.wait [#allocation4], 256  }
 0x422   :  { %597 = vsyncadd [#allocation4], 4294967040 }
 0x423   :  { %481 = vsyncpa [#allocation3], 1 }
 0x424   :  { %482 = vsyncpa [#allocation6], 1 }
 0x425   :  { %483 = vsyncpa [#allocation4], 1 }

</bundles_post_ra>
